<compile_context>
chip_gen: v6e
topology: v6e:2x2x1
jax: 0.10.0
libtpu: 0.0.40
codegen_flags: <defaults>
</compile_context>

<pallas_src>
import math

import jax
import jax.numpy as jnp
import numpy as np
from jax.experimental import pallas as pl
from jax.experimental.pallas import tpu as pltpu


# ---------------------------------------------------------------------------
# DCT filter construction (parameter setup; identical to PyTorch __init__)
# ---------------------------------------------------------------------------
def _build_filter(pos, freq, POS):
    result = math.cos(math.pi * freq * (pos + 0.5) / POS) / math.sqrt(POS)
    if freq == 0:
        return result
    return result * math.sqrt(2)


def get_dct_filter(tile_size_x, tile_size_y, channel, frenum):
    # Like the PyTorch original, trailing channels stay zero when channel is
    # not divisible by frenum*frenum.
    dct_filter = np.zeros((channel, tile_size_x, tile_size_y), dtype=np.float32)
    c_part = channel // (frenum * frenum)
    for i in range(frenum):
        for j in range(frenum):
            fx = np.array(
                [_build_filter(t, i, tile_size_x) for t in range(tile_size_x)],
                dtype=np.float32,
            )
            fy = np.array(
                [_build_filter(t, j, tile_size_y) for t in range(tile_size_y)],
                dtype=np.float32,
            )
            dct_filter[
                i * c_part * frenum + j * c_part:
                i * c_part * frenum + (j + 1) * c_part
            ] = fx[:, None] * fy[None, :]
    return jnp.asarray(dct_filter)


# ---------------------------------------------------------------------------
# Pallas kernel: elementwise x * weight (weight broadcasts over the batch dim)
# ---------------------------------------------------------------------------
def _dct_mul_kernel(x_ref, w_ref, o_ref):
    # Layout A: x (NB, TC, F) * w (TC, F)     -> (NB, TC, F)
    # Layout B: x (NB, TL)    * w (1, TL)     -> (NB, TL)
    o_ref[...] = x_ref[...] * w_ref[...]


# ---------------------------------------------------------------------------
# Block sizing helpers (generation- and dtype-aware)
# ---------------------------------------------------------------------------
def _sublane_multiple(itemsize):
    # Sub-32-bit dtypes pack along sublanes: f32 -> 8, bf16 -> 16, int8/fp8 -> 32.
    return max(8, 32 // max(1, itemsize))


def _tpu_vmem_config():
    """~4 MiB blocks amortize the ~0.35 us/grid-step overhead on every
    generation; the explicit vmem limit keeps 3 arrays x 2 buffers safely
    inside v7x's 64 MiB/TC VMEM while using the roomier 128 MiB on v5e/v6e."""
    target_block_bytes = 4 * 1024 * 1024
    vmem_limit_bytes = 40 * 1024 * 1024           # safe on all generations
    try:
        cap = pltpu.get_tpu_info().vmem_capacity_bytes
        if cap >= 96 * 1024 * 1024:               # v5e / v6e (128 MiB physical)
            vmem_limit_bytes = 64 * 1024 * 1024
    except Exception:
        pass
    return target_block_bytes, vmem_limit_bytes


def _choose_blocks_chw(N, C, F, itemsize, target_bytes):
    """(N, C, F) layout, full F on the lane axis. Returns (NB, TC)."""
    sub = _sublane_multiple(itemsize)
    row_bytes = F * itemsize
    max_rows = max(1, target_bytes // row_bytes)  # budget for NB * TC rows
    if C <= max_rows:
        tc = C                                    # whole channel dim per tile
        nb = min(N, max(1, max_rows // C))        # fill the rest with batch
    else:
        tc = min(C, max(sub, (max_rows // sub) * sub))
        nb = 1
    return nb, tc


def _choose_blocks_flat(N, L, itemsize, target_bytes):
    """(N, C*H*W) layout, lane-dense fallback. Returns (NB, TL)."""
    sub = _sublane_multiple(itemsize)
    if L <= 128:
        tl = L
    else:
        tl = min((L // 128) * 128, 8 * 1024)      # lane-dense, modest width
    nb_budget = max(1, target_bytes // max(1, tl * itemsize))
    if nb_budget >= N:
        nb = N
    else:
        nb = min(N, max(sub, (nb_budget // sub) * sub))
    return nb, tl


# ---------------------------------------------------------------------------
# Forward wrapper
# ---------------------------------------------------------------------------
def multi_spectral_dct_layer(x, weight):
    """x: (N, C, H, W), weight: (C, H, W) -> (N, C, H, W)"""
    assert x.ndim == 4, "x must been 4 dimensions, but got " + str(x.ndim)
    N, C, H, W = x.shape
    assert weight.shape == (C, H, W)

    F = H * W
    itemsize = jnp.dtype(x.dtype).itemsize
    target_bytes, vmem_limit_bytes = _tpu_vmem_config()

    # Cast weight to x.dtype (matches the reference; mixed-precision inputs
    # compute in x.dtype rather than PyTorch's f32 promotion).
    wf = weight.astype(x.dtype)

    if F % 128 == 0:
        # --- Layout A: (N, C, F), spatial dims lane-dense on the lane axis ---
        xf = x.reshape(N, C, F)
        w2 = wf.reshape(C, F)
        NB, TC = _choose_blocks_chw(N, C, F, itemsize, target_bytes)
        grid = (pl.cdiv(C, TC), pl.cdiv(N, NB))   # channel tiles outer, batch inner
        in_specs = [
            pl.BlockSpec((NB, TC, F), lambda c, n: (n, c, 0)),
            pl.BlockSpec((TC, F), lambda c, n: (c, 0)),   # batch-invariant
        ]
        out_specs = pl.BlockSpec((NB, TC, F), lambda c, n: (n, c, 0))
        out_shape = jax.ShapeDtypeStruct((N, C, F), x.dtype)
    else:
        # --- Layout B: H*W not a multiple of 128 (e.g. 7x7): flatten C*H*W ---
        # onto the lane axis so stores stay unmasked / lane-dense.
        L = C * F
        xf = x.reshape(N, L)
        w2 = wf.reshape(1, L)
        NB, TL = _choose_blocks_flat(N, L, itemsize, target_bytes)
        grid = (pl.cdiv(L, TL), pl.cdiv(N, NB))   # lane tiles outer, batch inner
        in_specs = [
            pl.BlockSpec((NB, TL), lambda l, n: (n, l)),
            pl.BlockSpec((1, TL), lambda l, n: (0, l)),   # batch-invariant
        ]
        out_specs = pl.BlockSpec((NB, TL), lambda l, n: (n, l))
        out_shape = jax.ShapeDtypeStruct((N, L), x.dtype)

    out = pl.pallas_call(
        _dct_mul_kernel,
        out_shape=out_shape,
        grid_spec=pltpu.PrefetchScalarGridSpec(
            num_scalar_prefetch=0,
            grid=grid,
            in_specs=in_specs,
            out_specs=out_specs,
        ),
        compiler_params=pltpu.CompilerParams(
            # Every output block is written exactly once -> both axes parallel
            # (lets v7x shard the grid across its two TensorCores).
            dimension_semantics=("parallel", "parallel"),
            vmem_limit_bytes=vmem_limit_bytes,
        ),
        cost_estimate=pl.CostEstimate(
            flops=N * C * F,
            transcendentals=0,
            bytes_accessed=(2 * N * C * F + C * F) * itemsize,
        ),
    )(xf, w2)

    return out.reshape(N, C, H, W)


# ---------------------------------------------------------------------------
# Pure-JAX reference for verification
# ---------------------------------------------------------------------------
def _ref(x, weight):
    return x * weight[None, :, :, :].astype(x.dtype)


if __name__ == "__main__":
    # Small shapes consistent with the module: height=width=16, channel=4, frenum=2
    N, C, H, W = 2, 4, 16, 16
    frenum = 2

    key = jax.random.PRNGKey(0)
    x = jax.random.normal(key, (N, C, H, W), dtype=jnp.float32)
    weight = get_dct_filter(H, W, C, frenum)

    out = multi_spectral_dct_layer(x, weight)
    out = jax.block_until_ready(out)

    ref = _ref(x, weight)
    np.testing.assert_allclose(np.asarray(out), np.asarray(ref), rtol=1e-6, atol=1e-6)

    print("KERNEL_OK")
</pallas_src>

<mosaic_0001>
module attributes {stable_mosaic.version = 11 : i64} {
  func.func @_dct_mul_kernel(%arg0: i32, %arg1: i32, %arg2: memref<2x4x256xf32, #tpu.memory_space<vmem>>, %arg3: memref<4x256xf32, #tpu.memory_space<vmem>>, %arg4: memref<2x4x256xf32, #tpu.memory_space<vmem>>) attributes {dimension_semantics = [#tpu.dimension_semantics<parallel>, #tpu.dimension_semantics<parallel>], iteration_bounds = array<i64: 1, 1>, scalar_prefetch = 0 : i64, scratch_operands = 0 : i64, tpu.core_type = #tpu.core_type<tc>, window_params = [{transform_indices = @transform_0, window_bounds = array<i64: 2, 4, 256>}, {transform_indices = @transform_1, window_bounds = array<i64: 4, 256>}, {transform_indices = @transform_2, window_bounds = array<i64: 2, 4, 256>}]} {
    %c0 = arith.constant 0 : index
    %c0_0 = arith.constant 0 : index
    %c0_1 = arith.constant 0 : index
    %0 = vector.load %arg2[%c0, %c0_0, %c0_1] : memref<2x4x256xf32, #tpu.memory_space<vmem>>, vector<2x4x256xf32>
    %c0_2 = arith.constant 0 : index
    %c0_3 = arith.constant 0 : index
    %1 = vector.load %arg3[%c0_2, %c0_3] : memref<4x256xf32, #tpu.memory_space<vmem>>, vector<4x256xf32>
    %2 = vector.shape_cast %1 : vector<4x256xf32> to vector<1x4x256xf32>
    %3 = vector.broadcast %2 : vector<1x4x256xf32> to vector<2x4x256xf32>
    %4 = arith.mulf %0, %3 : vector<2x4x256xf32>
    %c0_4 = arith.constant 0 : index
    %c0_5 = arith.constant 0 : index
    %c0_6 = arith.constant 0 : index
    %5 = vector.load %arg4[%c0_4, %c0_5, %c0_6] : memref<2x4x256xf32, #tpu.memory_space<vmem>>, vector<2x4x256xf32>
    tpu.vector_store %arg4[%c0_4, %c0_5, %c0_6], %4 {strides = array<i32>} : memref<2x4x256xf32, #tpu.memory_space<vmem>>, vector<2x4x256xf32>,
    return
  }
  func.func @transform_0(%arg0: i32, %arg1: i32) -> (i32, i32, i32) {
    %c0_i32 = arith.constant 0 : i32
    %c0_i32_0 = arith.constant 0 : i32
    return %arg1, %arg0, %c0_i32 : i32, i32, i32
  }
  func.func @transform_1(%arg0: i32, %arg1: i32) -> (i32, i32) {
    %c0_i32 = arith.constant 0 : i32
    %c0_i32_0 = arith.constant 0 : i32
    return %arg0, %c0_i32 : i32, i32
  }
  func.func @transform_2(%arg0: i32, %arg1: i32) -> (i32, i32, i32) {
    %c0_i32 = arith.constant 0 : i32
    %c0_i32_0 = arith.constant 0 : i32
    return %arg1, %arg0, %c0_i32 : i32, i32, i32
  }
}

</mosaic_0001>

<bundles_post_ra>
// kernel: tpu_custom_call.1
= control target key start
LH: loop header
LB: loop body
LE: loop exit
PB: predicated region body
PF: predicated region fallthrough
CT: control target
= control target key end

     0   :  { %7 = vsyncpa [#allocation3], 0  ;;  %s169_s0 = inlined_call_operand.hbm [shape: f32[2,4,256], index: 0, kind: input, shape index: {}]   ;;  %s170_s1 = inlined_call_operand.hbm [shape: f32[4,256], index: 1, kind: input, shape index: {}]   ;;  %s171_s2 = inlined_call_operand.hbm [shape: f32[2,4,256], index: 2, kind: output, shape index: {}]  }
   0x1   :  { %8 = vsyncpa [#allocation6], 0 }
   0x2   :  { %9 = vsyncpa [#allocation4], 0  ;;  %s134_s9 = smov [#allocation2]  }
   0x3   :  { %s15_s10 = sshll.u32 %s134_s9, 4  ;;  %s16_s10 = int_to_ptr.vmem [resolvable:$true] %s15_s10 }
   0x4   :  { %s76_s11 = scalar_lea.vmem %s16_s10, 256  ;;  %p81_p1 = scmp.lt.s32.totalorder %s16_s10, %s16_s10 }
   0x5   :  { %p77_p0 = scmp.ne.s32.totalorder %s16_s10, %s76_s11  ;;  %p82_p2 = scmp.lt.s32.totalorder %s76_s11, %s76_s11 }
   0x7   :  { %p83_p3 = por %p82_p2, %p81_p1 }
   0x9   :  { %p84_p4 = pnand %p83_p3, %p77_p0 }
   0xb   :  { %87 = shalt.err (!%p84_p4)
}
   0xc   :  { %s135_s12 = smov 128   ;;  %s136_s13 = smov 8  }
   0xd   :  { %21 = dma.hbm_to_vmem [thread:$0]  %s169_s0, 256, %s16_s10, [#allocation3], %s135_s12, %s135_s12, %s136_s13  }
   0xe   :  { %s137_s16 = smov [#allocation5]  }
   0xf   :  { %s28_s17 = sshll.u32 %s137_s16, 4  ;;  %s29_s17 = int_to_ptr.vmem [resolvable:$true] %s28_s17 }
  0x10   :  { %s96_s18 = scalar_lea.vmem %s29_s17, 128  ;;  %p101_p6 = scmp.lt.s32.totalorder %s29_s17, %s29_s17 }
  0x11   :  { %p97_p5 = scmp.ne.s32.totalorder %s29_s17, %s96_s18  ;;  %p102_p7 = scmp.lt.s32.totalorder %s96_s18, %s96_s18 }
  0x13   :  { %p103_p8 = por %p102_p7, %p101_p6 }
  0x15   :  { %p104_p9 = pnand %p103_p8, %p97_p5 }
  0x17   :  { %107 = shalt.err (!%p104_p9)
}
  0x18   :  { %31 = dma.hbm_to_vmem [thread:$0]  %s170_s1, 128, %s29_s17, [#allocation6]  }
  0x19   :  { %128 = dma.done.wait [#allocation3], 256  }
  0x1a   :  { %129 = vsyncadd [#allocation3], 4294967040 }
  0x1b   :  { %130 = dma.done.wait [#allocation6], 128  }
  0x1c   :  { %131 = vsyncadd [#allocation6], 4294967168  ;;  %s138_s21 = smov [#allocation7]   ;;  %v38_v0 = vld [vmem:[#allocation2] sm:$0xff]  ;;  %v40_v1 = vld [vmem:[#allocation5] sm:$0xff] }
  0x1d   :  { %s50_s0 = sshll.u32 %s138_s21, 4  ;;  %v39_v2 = vld [vmem:[#allocation2 + $0x8] sm:$0xff]  ;;  %v41_v3 = vmul.f32 %v40_v1, %v38_v0  ;;  %s51_s0 = int_to_ptr.vmem [resolvable:$true] %s50_s0 }
  0x1e   :  { %v42_v4 = vmul.f32 %v40_v1, %v39_v2  ;;  %s108_s22 = scalar_lea.vmem %s51_s0, 256  ;;  %p113_p11 = scmp.lt.s32.totalorder %s51_s0, %s51_s0 }
  0x1f   :  { %43 = vst [vmem:[#allocation7] sm:$0xff] %v41_v3  ;;  %p109_p10 = scmp.ne.s32.totalorder %s51_s0, %s108_s22  ;;  %p114_p12 = scmp.lt.s32.totalorder %s108_s22, %s108_s22 }
  0x20   :  { %44 = vst [vmem:[#allocation7 + $0x8] sm:$0xff] %v42_v4 }
  0x21   :  { %p115_p13 = por %p114_p12, %p113_p11 }
  0x23   :  { %p116_p0 = pnand %p115_p13, %p109_p10 }
  0x25   :  { %119 = shalt.err (!%p116_p0)
}
  0x26   :  { %56 = dma.vmem_to_hbm [thread:$0]  %s51_s0, 256, %s171_s2, [#allocation4], %s135_s12, %s135_s12, %s136_s13  }
  0x27   :  { %132 = dma.done.wait [#allocation4], 256  }
  0x28   :  { %133 = vsyncadd [#allocation4], 4294967040 }
  0x29   :  { %60 = vsyncpa [#allocation3], 1 }
  0x2a   :  { %61 = vsyncpa [#allocation6], 1 }
  0x2b   :  { %62 = vsyncpa [#allocation4], 1 }

</bundles_post_ra>
